<compile_context>
chip_gen: v6e
topology: v6e:2x2x1
jax: 0.10.0
libtpu: 0.0.40
codegen_flags: <defaults>
</compile_context>

<pallas_src>
import jax
import jax.numpy as jnp
from jax.experimental import pallas as pl
from jax.experimental.pallas import tpu as pltpu


def rotary_kernel(x_ref, cos_ref, sin_ref, o_ref):
    """out = x * cos + roll(x, D/2) * sin_signed  (rotate_half sign folded into sin)."""
    # Tables loaded/upcast once per grid step and reused for every batch row.
    cos = cos_ref[...].astype(jnp.float32)          # (tn, D)
    sin = sin_ref[...].astype(jnp.float32)          # (tn, D), sign already folded
    half = x_ref.shape[-1] // 2
    # Static unroll over the (small) batch dim: 2-D tiles keep the XLU roll on
    # the canonical (sublane, lane) layout and the stores lane-contiguous.
    for b in range(x_ref.shape[0]):
        x = x_ref[b].astype(jnp.float32)                 # (tn, D)
        rot = pltpu.roll(x, shift=half, axis=1)          # [x2, x1]  (XLU, free-ish)
        o_ref[b] = (x * cos + rot * sin).astype(o_ref.dtype)


def _pick_seq_tile(N, B, D, itemsize):
    """Largest sequence tile that divides N, respects sublane packing and a
    conservative double-buffered VMEM budget; prefers >= 2 grid steps so the
    'parallel' grid axis can be sharded across v7x's two TensorCores."""
    pack = max(8, 32 // max(1, itemsize))        # 8 f32 / 16 bf16 / 32 int8
    budget = 10 * 1024 * 1024                    # under default scoped VMEM on all chips
    # double-buffered bytes per sequence row: x + out (B rows each) + cos + sin
    per_row = 2 * (2 * B + 2) * D * itemsize
    cap = max(pack, budget // per_row)
    cap = min(cap, 4096)

    tn = N
    for cand in range(min(N, cap), 0, -1):
        if N % cand:
            continue
        if cand % pack and cand != N:
            continue
        tn = cand
        break

    # Give both v7x TensorCores work when the sequence is long enough.
    if N // tn < 2:
        for cand in range(tn // 2, pack - 1, -1):
            if N % cand == 0 and cand % pack == 0:
                tn = cand
                break
    return tn


def rotary_embedding(x):
    """RotaryEmbedding.forward for x of shape (B, N, D), D even."""
    assert x.ndim == 3, "expected (batch, seq, dim) input"
    B, N, D = x.shape
    assert D % 2 == 0, "feature dim must be even for rotate_half"
    half = D // 2

    # --- SinusoidalEmbeddings (cheap setup glue, plain JAX / XLA) ---
    inv_freq = 1.0 / (10000.0 ** (jnp.arange(0, D, 2, dtype=jnp.float32) / D))
    t = jnp.arange(N, dtype=jnp.float32)
    freqs = t[:, None] * inv_freq[None, :]                  # (N, D//2)
    pos_emb = jnp.concatenate([freqs, freqs], axis=-1)      # (N, D)
    cos = jnp.cos(pos_emb)
    # Fold the rotate_half sign into sin:  rotate_half(x) = roll(x, D/2) * sign
    sign = jnp.concatenate(
        [jnp.full((half,), -1.0, jnp.float32), jnp.ones((half,), jnp.float32)]
    )
    sin_signed = jnp.sin(pos_emb) * sign[None, :]
    # Stream the tables at the input dtype (halves table HBM bytes for bf16).
    cos = cos.astype(x.dtype)
    sin_signed = sin_signed.astype(x.dtype)

    tn = _pick_seq_tile(N, B, D, jnp.dtype(x.dtype).itemsize)
    grid = (N // tn,)

    return pl.pallas_call(
        rotary_kernel,
        out_shape=jax.ShapeDtypeStruct((B, N, D), x.dtype),
        grid_spec=pltpu.PrefetchScalarGridSpec(
            num_scalar_prefetch=0,
            grid=grid,
            in_specs=[
                pl.BlockSpec((B, tn, D), lambda i: (0, i, 0)),   # x: whole batch per step
                pl.BlockSpec((tn, D), lambda i: (i, 0)),          # cos (shared across batch)
                pl.BlockSpec((tn, D), lambda i: (i, 0)),          # sin_signed
            ],
            out_specs=pl.BlockSpec((B, tn, D), lambda i: (0, i, 0)),
        ),
        compiler_params=pltpu.CompilerParams(
            dimension_semantics=("parallel",),
            vmem_limit_bytes=32 * 1024 * 1024,
        ),
    )(x, cos, sin_signed)


def rotary_embedding_ref(x):
    """Pure-JAX reference mirroring the PyTorch module exactly."""
    B, N, D = x.shape
    inv_freq = 1.0 / (10000.0 ** (jnp.arange(0, D, 2, dtype=jnp.float32) / D))
    t = jnp.arange(N, dtype=jnp.float32)
    freqs = t[:, None] * inv_freq[None, :]
    pos_emb = jnp.concatenate([freqs, freqs], axis=-1)       # (N, D)
    half = D // 2
    rot = jnp.concatenate([-x[..., half:], x[..., :half]], axis=-1)
    return x * jnp.cos(pos_emb) + rot * jnp.sin(pos_emb)


if __name__ == "__main__":
    key = jax.random.PRNGKey(0)
    # Small shapes consistent with (batch, seq, dim); D=128 keeps the lane dim
    # dense (no masked stores) and is a typical rotary head dim.
    B, N, D = 2, 64, 128
    x = jax.random.normal(key, (B, N, D), dtype=jnp.float32)

    out = jax.block_until_ready(rotary_embedding(x))
    ref = rotary_embedding_ref(x)
    assert out.shape == ref.shape and out.dtype == x.dtype
    assert jnp.allclose(out, ref, atol=1e-5, rtol=1e-5), "f32 mismatch vs reference"

    # bf16 path: tables are streamed at bf16, so use a loose tolerance.
    xb = x.astype(jnp.bfloat16)
    outb = jax.block_until_ready(rotary_embedding(xb))
    refb = rotary_embedding_ref(xb.astype(jnp.float32))
    assert outb.dtype == jnp.bfloat16
    assert jnp.allclose(outb.astype(jnp.float32), refb, atol=1e-1, rtol=5e-2), \
        "bf16 mismatch vs reference"

    print("KERNEL_OK")
</pallas_src>

<mosaic_0001>
module attributes {stable_mosaic.version = 11 : i64} {
  func.func @rotary_kernel(%arg0: i32, %arg1: memref<2x32x128xf32, #tpu.memory_space<vmem>>, %arg2: memref<32x128xf32, #tpu.memory_space<vmem>>, %arg3: memref<32x128xf32, #tpu.memory_space<vmem>>, %arg4: memref<2x32x128xf32, #tpu.memory_space<vmem>>) attributes {dimension_semantics = [#tpu.dimension_semantics<parallel>], iteration_bounds = array<i64: 2>, scalar_prefetch = 0 : i64, scratch_operands = 0 : i64, tpu.core_type = #tpu.core_type<tc>, window_params = [{transform_indices = @transform_0, window_bounds = array<i64: 2, 32, 128>}, {transform_indices = @transform_1, window_bounds = array<i64: 32, 128>}, {transform_indices = @transform_2, window_bounds = array<i64: 32, 128>}, {transform_indices = @transform_3, window_bounds = array<i64: 2, 32, 128>}]} {
    %c0 = arith.constant 0 : index
    %c0_0 = arith.constant 0 : index
    %0 = vector.load %arg2[%c0, %c0_0] : memref<32x128xf32, #tpu.memory_space<vmem>>, vector<32x128xf32>
    %c0_1 = arith.constant 0 : index
    %c0_2 = arith.constant 0 : index
    %1 = vector.load %arg3[%c0_1, %c0_2] : memref<32x128xf32, #tpu.memory_space<vmem>>, vector<32x128xf32>
    %c0_3 = arith.constant 0 : index
    %c0_4 = arith.constant 0 : index
    %c0_5 = arith.constant 0 : index
    %2 = vector.load %arg1[%c0_3, %c0_4, %c0_5] : memref<2x32x128xf32, #tpu.memory_space<vmem>>, vector<1x32x128xf32>
    %3 = vector.shape_cast %2 : vector<1x32x128xf32> to vector<32x128xf32>
    %c64_i32 = arith.constant 64 : i32
    %4 = tpu.dynamic_rotate %3 by %c64_i32 dim 1 : vector<32x128xf32>, i32 -> vector<32x128xf32>
    %5 = arith.mulf %3, %0 : vector<32x128xf32>
    %6 = arith.mulf %4, %1 : vector<32x128xf32>
    %7 = arith.addf %5, %6 : vector<32x128xf32>
    %c0_6 = arith.constant 0 : index
    %c0_7 = arith.constant 0 : index
    %c0_8 = arith.constant 0 : index
    %8 = vector.load %arg4[%c0_6, %c0_7, %c0_8] : memref<2x32x128xf32, #tpu.memory_space<vmem>>, vector<1x32x128xf32>
    %9 = vector.shape_cast %8 : vector<1x32x128xf32> to vector<32x128xf32>
    %10 = vector.shape_cast %7 : vector<32x128xf32> to vector<1x32x128xf32>
    tpu.vector_store %arg4[%c0_6, %c0_7, %c0_8], %10 {strides = array<i32>} : memref<2x32x128xf32, #tpu.memory_space<vmem>>, vector<1x32x128xf32>,
    %c1 = arith.constant 1 : index
    %c0_9 = arith.constant 0 : index
    %c0_10 = arith.constant 0 : index
    %11 = vector.load %arg1[%c1, %c0_9, %c0_10] : memref<2x32x128xf32, #tpu.memory_space<vmem>>, vector<1x32x128xf32>
    %12 = vector.shape_cast %11 : vector<1x32x128xf32> to vector<32x128xf32>
    %c64_i32_11 = arith.constant 64 : i32
    %13 = tpu.dynamic_rotate %12 by %c64_i32_11 dim 1 : vector<32x128xf32>, i32 -> vector<32x128xf32>
    %14 = arith.mulf %12, %0 : vector<32x128xf32>
    %15 = arith.mulf %13, %1 : vector<32x128xf32>
    %16 = arith.addf %14, %15 : vector<32x128xf32>
    %c1_12 = arith.constant 1 : index
    %c0_13 = arith.constant 0 : index
    %c0_14 = arith.constant 0 : index
    %17 = vector.load %arg4[%c1_12, %c0_13, %c0_14] : memref<2x32x128xf32, #tpu.memory_space<vmem>>, vector<1x32x128xf32>
    %18 = vector.shape_cast %17 : vector<1x32x128xf32> to vector<32x128xf32>
    %19 = vector.shape_cast %16 : vector<32x128xf32> to vector<1x32x128xf32>
    tpu.vector_store %arg4[%c1_12, %c0_13, %c0_14], %19 {strides = array<i32>} : memref<2x32x128xf32, #tpu.memory_space<vmem>>, vector<1x32x128xf32>,
    return
  }
  func.func @transform_0(%arg0: i32) -> (i32, i32, i32) {
    %c0_i32 = arith.constant 0 : i32
    %c0_i32_0 = arith.constant 0 : i32
    %c0_i32_1 = arith.constant 0 : i32
    return %c0_i32, %arg0, %c0_i32_0 : i32, i32, i32
  }
  func.func @transform_1(%arg0: i32) -> (i32, i32) {
    %c0_i32 = arith.constant 0 : i32
    %c0_i32_0 = arith.constant 0 : i32
    return %arg0, %c0_i32 : i32, i32
  }
  func.func @transform_2(%arg0: i32) -> (i32, i32) {
    %c0_i32 = arith.constant 0 : i32
    %c0_i32_0 = arith.constant 0 : i32
    return %arg0, %c0_i32 : i32, i32
  }
  func.func @transform_3(%arg0: i32) -> (i32, i32, i32) {
    %c0_i32 = arith.constant 0 : i32
    %c0_i32_0 = arith.constant 0 : i32
    %c0_i32_1 = arith.constant 0 : i32
    return %c0_i32, %arg0, %c0_i32_0 : i32, i32, i32
  }
}

</mosaic_0001>

<bundles_post_ra>
// kernel: tpu_custom_call.1
= control target key start
LH: loop header
LB: loop body
LE: loop exit
PB: predicated region body
PF: predicated region fallthrough
CT: control target
= control target key end

     0   :  { %8 = vsyncpa [#allocation3], 0  ;;  %s980_s0 = inlined_call_operand.hbm [shape: f32[2,64,128], index: 0, kind: input, shape index: {}]   ;;  %s981_s1 = inlined_call_operand.hbm [shape: f32[64,128], index: 1, kind: input, shape index: {}]   ;;  %s982_s2 = inlined_call_operand.hbm [shape: f32[64,128], index: 2, kind: input, shape index: {}]   ;;  %s983_s3 = inlined_call_operand.hbm [shape: f32[2,64,128], index: 3, kind: output, shape index: {}]  }
   0x1   :  { %10 = vsyncpa [#allocation3 + $0x1], 0 }
   0x2   :  { %11 = vsyncpa [#allocation6], 0 }
   0x3   :  { %13 = vsyncpa [#allocation6 + $0x1], 0 }
   0x4   :  { %14 = vsyncpa [#allocation4], 0 }
   0x5   :  { %16 = vsyncpa [#allocation4 + $0x1], 0  ;;  %s758_s12 = smov 0   ;;  %s760_s13 = smov 0  }
   0x6   :  { %s762_s14 = smov 0   ;;  %s764_s15 = smov 0  }
   0x7 LB: > { %s779_s16 = sadd.s32 4294967295, %s718_s15   ;;  %s514_s17 = sadd.s32 4294967294, %s718_s15   ;;  %s718_s15 = sphi %s764_s15, %s996_s15   ;;  %s714_s14 = sphi %s762_s14, %s995_s14   ;;  %s710_s13 = sphi %s760_s13, %s994_s13   ;;  %s706_s12 = sphi %s758_s12, %s993_s12  }
   0x8   : > { %s783_s18 = sadd.s32 1, %s718_s15   ;;  %s29_s19 = sadd.s32 1, %s714_s14 }
   0x9   : > { %s26_s20 = ssub.s32 %s718_s15, %s783_s18  ;;  %p36_p0 = scmp.ne.s32.totalorder %s714_s14, %s710_s13 }
   0xa   : > { %p27_p1 = scmp.eq.s32.totalorder %s26_s20, 0  ;;  %p37_p2 = scmp.eq.s32.totalorder %s718_s15, 0 }
   0xb   : > { %p42_p3 = scmp.ne.s32.totalorder %s710_s13, %s706_s12  ;;  %p43_p4 = scmp.eq.s32.totalorder %s779_s16, 0 }
   0xc   : > { %s795_s21 = scalar_select %p27_p1, %s714_s14, %s29_s19  }
   0xd   : > { %p797_p5 = por %p37_p2, %p36_p0  ;;  %p801_p6 = por %p43_p4, %p42_p3 }
   0xe   : > { %p118_p7 = scmp.eq.s32.totalorder %s779_s16, 1  ;;  %p124_p8 = scmp.eq.s32.totalorder %s514_s17, 1 }
   0xf   : > { %p984_p11 = scmp.ge.s32.totalorder %s718_s15, 2 }
  0x10   : > { %p806_p9 = por %p118_p7, %p36_p0  ;;  %p810_p10 = por %p124_p8, %p42_p3 }
  0x11   : > { %140 = sbr.rel (%p984_p11) target bundleno = 82 (0x52), region = 16 }
  0x12   : > { %s988_s24 = scalar_select %p806_p9, 1, 0 }
  0x13   : > { %s989_s25 = scalar_select %p810_p10, 1, 0 }
  0x16   : > { %s818_s26 = sand.u32 1, %s714_s14   ;;  %s821_s27 = sshll.u32 %s718_s15, 9 }
  0x17   : > { %s517_s28 = sshll.u32 %s818_s26, 6  ;;  %s154_s4 = scalar_lea.hbm %s980_s0, %s821_s27 }
  0x18   : > { %s550_s5 = scalar_select %p797_p5, [#allocation0], [#allocation13] }
  0x19   : > { %s148_s6 = scalar_lea.vmem [#allocation2], %s517_s28  ;;  %s720_s9 = smov 1024  }
  0x1a   : > { %s167_s7 = sshll.u32 %s148_s6, 4  ;;  %s159_s8 = sld [smem:[%s550_s5]]   ;;  %s168_s7 = int_to_ptr.vmem [resolvable:$true] %s167_s7 }
  0x1b   : > { %551 = sst [smem:[#allocation10]] (%p797_p5), %s720_s9  ;;  %s721_s10 = smov 512  }
  0x1c   : > { %552 = sst [smem:[#allocation10 + $0x1]] (%p797_p5), %s721_s10  ;;  %s722_s11 = smov 4  }
  0x1d   : > { %553 = sst [smem:[#allocation10 + $0x2]] (%p797_p5), %s722_s11  ;;  %s723_s17 = smov 128  }
  0x1e   : > { %554 = sst [smem:[#allocation10 + $0x3]] (%p797_p5), %s723_s17  ;;  %s724_s20 = smov 8  }
  0x1f   : > { %555 = sst [smem:[#allocation10 + $0x4]] (%p797_p5), %s723_s17  ;;  %s145_s29 = scalar_lea.sflag [#allocation3], %s818_s26 }
  0x20   : > { %s520_s19 = sshll.u32 %s159_s8, 26  ;;  %556 = sst [smem:[#allocation10 + $0x5]] (%p797_p5), %s724_s20 }
  0x21   : > { %s521_s28 = sadd.s32 134217728, %s520_s19  ;;  %s725_s30 = smov 131072  }
  0x22   : > { %557 = dma.general (%p797_p5), %s154_s4, 1024, %s168_s7, %s145_s29, %s725_s30, [#allocation10], %s521_s28, 0  }
  0x23   : > { %s190_s5 = sand.u32 1, %s718_s15   ;;  %s522_s6 = sshll.u32 %s818_s26, 5 }
  0x24   : > { %s851_s11 = scalar_lea.hbm %s981_s1, %s821_s27  ;;  %s194_s8 = scalar_lea.vmem [#allocation5], %s522_s6 }
  0x25   : > { %s201_s17 = sshll.u32 %s194_s8, 4  ;;  %s857_s4 = scalar_lea.sflag [#allocation6], %s190_s5  ;;  %s855_s17 = int_to_ptr.vmem [resolvable:$true] %s201_s17 }
  0x26   : > { %s624_s7 = scalar_lea.hbm %s851_s11, 512  ;;  %s628_s28 = scalar_lea.hbm %s981_s1, 1024 }
  0x27   : > { %p625_p12 = scmp.ne.s32.totalorder %s851_s11, %s624_s7  ;;  %p629_p1 = scmp.lt.s32.totalorder %s851_s11, %s981_s1 }
  0x28   : > { %p630_p2 = scmp.lt.s32.totalorder %s628_s28, %s624_s7 }
  0x29   : > { %p626_p13 = pnand %p625_p12, %p797_p5 }
  0x2a   : > { %p631_p3 = por %p630_p2, %p629_p1 }
  0x2b   : > { %p627_p0 = pneg %p626_p13 }
  0x2d   : > { %p632_p4 = pnand %p631_p3, %p627_p0 }
  0x2f   : > { %635 = shalt.err (!%p632_p4)
}
  0x30   : > { %s636_s5 = scalar_lea.vmem %s855_s17, 512  ;;  %s726_s9 = smov [#allocation5]  }
  0x31   : > { %p637_p7 = scmp.ne.s32.totalorder %s855_s17, %s636_s5  ;;  %s640_s10 = sshll.u32 %s726_s9, 4  ;;  %s641_s10 = int_to_ptr.vmem [resolvable:$false] %s640_s10 }
  0x32   : > { %s642_s8 = scalar_lea.vmem %s641_s10, 1024  ;;  %p643_p13 = scmp.lt.s32.totalorder %s855_s17, %s641_s10 }
  0x33   : > { %p638_p8 = pnand %p637_p7, %p797_p5  ;;  %p644_p11 = scmp.lt.s32.totalorder %s642_s8, %s636_s5 }
  0x35   : > { %p639_p12 = pneg %p638_p8  ;;  %p645_p10 = por %p644_p11, %p643_p13 }
  0x37   : > { %p646_p9 = pnand %p645_p10, %p639_p12 }
  0x39   : > { %649 = shalt.err (!%p646_p9)
}
  0x3a   : > { %s727_s7 = smov 128   ;;  %s728_s19 = smov 8  }
  0x3b   : > { %558 = dma.hbm_to_vmem [thread:$0]  (%p797_p5), %s851_s11, 512, %s855_s17, %s857_s4, %s727_s7, %s727_s7, %s728_s19  }
  0x3c   : > { %s215_s20 = scalar_lea.vmem [#allocation7], %s522_s6  ;;  %s889_s5 = scalar_lea.hbm %s982_s2, %s821_s27 }
  0x3d   : > { %s222_s28 = sshll.u32 %s215_s20, 4  ;;  %s650_s9 = scalar_lea.hbm %s889_s5, 512  ;;  %s223_s28 = int_to_ptr.vmem [resolvable:$true] %s222_s28 }
  0x3e   : > { %p651_p9 = scmp.ne.s32.totalorder %s889_s5, %s650_s9  ;;  %s654_s26 = scalar_lea.hbm %s982_s2, 1024 }
  0x3f   : > { %p655_p0 = scmp.lt.s32.totalorder %s889_s5, %s982_s2  ;;  %p656_p1 = scmp.lt.s32.totalorder %s654_s26, %s650_s9 }
  0x40   : > { %p652_p10 = pnand %p651_p9, %p797_p5 }
  0x41   : > { %p657_p2 = por %p656_p1, %p655_p0 }
  0x42   : > { %p653_p11 = pneg %p652_p10 }
  0x44   : > { %p658_p3 = pnand %p657_p2, %p653_p11 }
  0x46   : > { %661 = shalt.err (!%p658_p3)
}
  0x47   : > { %s662_s27 = scalar_lea.vmem %s223_s28, 512  ;;  %s729_s17 = smov [#allocation7]  }
  0x48   : > { %p663_p4 = scmp.ne.s32.totalorder %s223_s28, %s662_s27  ;;  %s666_s20 = sshll.u32 %s729_s17, 4  ;;  %s667_s20 = int_to_ptr.vmem [resolvable:$false] %s666_s20 }
  0x49   : > { %s668_s29 = scalar_lea.vmem %s667_s20, 1024  ;;  %p669_p12 = scmp.lt.s32.totalorder %s223_s28, %s667_s20 }
  0x4a   : > { %p664_p7 = pnand %p663_p4, %p797_p5  ;;  %p670_p13 = scmp.lt.s32.totalorder %s668_s29, %s662_s27 }
  0x4c   : > { %p665_p8 = pneg %p664_p7  ;;  %p671_p9 = por %p670_p13, %p669_p12 }
  0x4e   : > { %p672_p10 = pnand %p671_p9, %p665_p8 }
  0x50   : > { %675 = shalt.err (!%p672_p10)
}
  0x51   : > { %559 = dma.hbm_to_vmem [thread:$0]  (%p797_p5), %s889_s5, 512, %s223_s28, %s857_s4, %s727_s7, %s727_s7, %s728_s19  }
  0x52 PF: > { %p528_p11 = scmp.ge.s32.totalorder %s718_s15, 1  ;;  %p230_p0 = scmp.lt.s32.totalorder %s718_s15, 3 }
  0x54   : > { %p231_p1 = pnand %p528_p11, %p230_p0 }
  0x55   : > { %s914_s30 = sand.u32 (!%p231_p1), 1, %s710_s13  }
  0x56   : > { %234 = sbr.rel (%p231_p1) target bundleno = 239 (0xef), region = 32  ;;  %s529_s22 = sshll.u32 (!%p231_p1), %s914_s30, 6 }
  0x57   : > { %s237_s9 = scalar_lea.sflag (!%p231_p1), [#allocation3], %s914_s30  ;;  %s240_s10 = scalar_lea.vmem (!%p231_p1), [#allocation2], %s529_s22 }
  0x5b   : > { %693 = dma.done.wait (%p801_p6), %s237_s9, 1024  }
  0x5c   : > { %695 = vsyncadd (%p801_p6), %s237_s9, 4294966272  ;;  %s245_s4 = sand.u32 1, %s779_s16   ;;  %s530_s7 = sshll.u32 %s914_s30, 5 }
  0x5d   : > { %s246_s19 = scalar_lea.sflag [#allocation6], %s245_s4  ;;  %s249_s28 = scalar_lea.vmem [#allocation5], %s530_s7 }
  0x5e   : > { %697 = dma.done.wait (%p801_p6), %s246_s19, 1024  }
  0x5f   : > { %699 = vsyncadd (%p801_p6), %s246_s19, 4294966272  ;;  %v305_v0 = vld [vmem:[%s240_s10 + $0x10] sm:$0xff]  ;;  %v303_v1 = vld [vmem:[%s240_s10] sm:$0xff]  ;;  %s730_s5 = smov 64   ;;  %s258_s23 = scalar_lea.vmem [#allocation7], %s530_s7 }
  0x60   : > { %311 = vrot.lane.b32.xlu1 %v305_v0, %s730_s5  ;;  %307 = vrot.lane.b32.xlu0 %v303_v1, %s730_s5  ;;  %v306_v2 = vld [vmem:[%s240_s10 + $0x18] sm:$0xff]  ;;  %v304_v3 = vld [vmem:[%s240_s10 + $0x8] sm:$0xff]  ;;  %s932_s8 = scalar_lea.vmem [#allocation8], %s529_s22  ;;  %s362_s26 = scalar_lea.sflag [#allocation4], %s914_s30 }
  0x61   : > { %v534_v4 = vld [vmem:[%s240_s10 + $0x28] sm:$0xff]  ;;  %v533_v5 = vld [vmem:[%s240_s10 + $0x20] sm:$0xff]  ;;  %v536_v6 = vld [vmem:[%s240_s10 + $0x38] sm:$0xff] }
  0x62   : > { %v535_v7 = vld [vmem:[%s240_s10 + $0x30] sm:$0xff]  ;;  %v295_v9 = vld [vmem:[%s249_s28] sm:$0xff]  ;;  %v298_v14 = vld [vmem:[%s249_s28 + $0x18] sm:$0xff] }
  0x63   : > { %v297_v8 = vld [vmem:[%s249_s28 + $0x10] sm:$0xff]  ;;  %v299_v11 = vld [vmem:[%s258_s23] sm:$0xff]  ;;  %v315_v13 = vmul.f32 %v303_v1, %v295_v9  ;;  %v296_v15 = vld [vmem:[%s249_s28 + $0x8] sm:$0xff]  ;;  %v318_v22 = vmul.f32 %v306_v2, %v298_v14  ;;  %v344_v31 = vmul.f32 %v533_v5, %v295_v9  ;;  %v347_v38 = vmul.f32 %v536_v6, %v298_v14 }
  0x64   : > { %313 = vrot.lane.b32.xlu1 %v306_v2, %s730_s5  ;;  %309 = vrot.lane.b32.xlu0 %v304_v3, %s730_s5  ;;  %v301_v10 = vld [vmem:[%s258_s23 + $0x10] sm:$0xff]  ;;  %v317_v12 = vmul.f32 %v305_v0, %v297_v8  ;;  %v302_v20 = vld [vmem:[%s258_s23 + $0x18] sm:$0xff]  ;;  %v316_v23 = vmul.f32 %v304_v3, %v296_v15  ;;  %v345_v30 = vmul.f32 %v534_v4, %v296_v15 }
  0x65   : > { %v300_v21 = vld [vmem:[%s258_s23 + $0x8] sm:$0xff]  ;;  %v346_v39 = vmul.f32 %v535_v7, %v297_v8 }
  0x68   : > { %338 = vrot.lane.b32.xlu1 %v534_v4, %s730_s5  ;;  %336 = vrot.lane.b32.xlu0 %v533_v5, %s730_s5 }
  0x6c   : > { %342 = vrot.lane.b32.xlu1 %v536_v6, %s730_s5  ;;  %340 = vrot.lane.b32.xlu0 %v535_v7, %s730_s5 }
  0xd2   : > { %v312_v16 = vpop.permute.xlu1 %311  ;;  %v308_v17 = vpop.permute.xlu0 %307 }
  0xd3   : > { %v321_v18 = vmul.f32 %v312_v16, %v301_v10  ;;  %v319_v19 = vmul.f32 %v308_v17, %v299_v11 }
  0xd5   : > { %v325_v24 = vadd.f32 %v321_v18, %v317_v12  ;;  %v323_v25 = vadd.f32 %v319_v19, %v315_v13 }
  0xd6   : > { %v314_v26 = vpop.permute.xlu1 %313  ;;  %v310_v27 = vpop.permute.xlu0 %309 }
  0xd7   : > { %329 = vst [vmem:[%s932_s8 + $0x10] sm:$0xff] %v325_v24  ;;  %327 = vst [vmem:[%s932_s8] sm:$0xff] %v323_v25  ;;  %v322_v28 = vmul.f32 %v314_v26, %v302_v20  ;;  %v320_v29 = vmul.f32 %v310_v27, %v300_v21 }
  0xd9   : > { %v326_v32 = vadd.f32 %v322_v28, %v318_v22  ;;  %v324_v33 = vadd.f32 %v320_v29, %v316_v23 }
  0xda   : > { %v339_v34 = vpop.permute.xlu1 %338  ;;  %v337_v35 = vpop.permute.xlu0 %336 }
  0xdb   : > { %330 = vst [vmem:[%s932_s8 + $0x18] sm:$0xff] %v326_v32  ;;  %328 = vst [vmem:[%s932_s8 + $0x8] sm:$0xff] %v324_v33  ;;  %v349_v36 = vmul.f32 %v339_v34, %v300_v21  ;;  %v348_v37 = vmul.f32 %v337_v35, %v299_v11 }
  0xdd   : > { %v353_v40 = vadd.f32 %v349_v36, %v345_v30  ;;  %v352_v41 = vadd.f32 %v348_v37, %v344_v31 }
  0xde   : > { %v343_v42 = vpop.permute.xlu1 %342  ;;  %v341_v43 = vpop.permute.xlu0 %340 }
  0xdf   : > { %538 = vst [vmem:[%s932_s8 + $0x28] sm:$0xff] %v353_v40  ;;  %537 = vst [vmem:[%s932_s8 + $0x20] sm:$0xff] %v352_v41  ;;  %v351_v44 = vmul.f32 %v343_v42, %v302_v20  ;;  %v350_v45 = vmul.f32 %v341_v43, %v301_v10 }
  0xe1   : > { %v355_v46 = vadd.f32 %v351_v44, %v347_v38  ;;  %v354_v47 = vadd.f32 %v350_v45, %v346_v39 }
  0xe3   : > { %540 = vst [vmem:[%s932_s8 + $0x38] sm:$0xff] %v355_v46  ;;  %539 = vst [vmem:[%s932_s8 + $0x30] sm:$0xff] %v354_v47 }
  0xe4   : > { %s549_s6 = sshll.u32 %s779_s16, 9  ;;  %s385_s11 = sshll.u32 %s932_s8, 4  ;;  %s386_s11 = int_to_ptr.vmem [resolvable:$true] %s385_s11 }
  0xe5   : > { %s374_s20 = scalar_lea.hbm %s983_s3, %s549_s6  ;;  %s731_s29 = smov 512  }
  0xe6   : > { %p990_p5 = scmp.ne.s32.totalorder %s988_s24, 0  ;;  %s732_s30 = smov 1024  }
  0xe7   : > { %s733_s22 = smov 4   ;;  %s734_s9 = smov 128  }
  0xe8   : > { %563 = sst [smem:[#allocation12]] (%p990_p5), %s731_s29  ;;  %s735_s16 = smov 8  }
  0xe9   : > { %564 = sst [smem:[#allocation12 + $0x1]] (%p990_p5), %s732_s30  ;;  %s736_s10 = smov 131072  }
  0xea   : > { %565 = sst [smem:[#allocation12 + $0x2]] (%p990_p5), %s733_s22  ;;  %s737_s4 = smov 0  }
  0xeb   : > { %566 = sst [smem:[#allocation12 + $0x3]] (%p990_p5), %s734_s9 }
  0xec   : > { %567 = sst [smem:[#allocation12 + $0x4]] (%p990_p5), %s734_s9 }
  0xed   : > { %568 = sst [smem:[#allocation12 + $0x5]] (%p990_p5), %s735_s16 }
  0xee   : > { %569 = dma.general (%p990_p5), %s386_s11, 1024, %s374_s20, %s362_s26, %s736_s10, [#allocation12], %s737_s4, 0  }
  0xef PF: > { %s413_s7 = sand.u32 1, %s706_s12   ;;  %p991_p6 = scmp.ne.s32.totalorder %s989_s25, 0 }
  0xf0   : > { %p992_p2 = scmp.ge.s32.totalorder %s718_s15, 2  ;;  %s414_s19 = scalar_lea.sflag [#allocation4], %s413_s7 }
  0xf2   : > { %p572_p3 = pnand %p992_p2, %p991_p6 }
  0xf4   : > { %p573_p4 = pneg %p572_p3 }
  0xf6   : > { %701 = dma.done.wait (%p573_p4), %s414_s19, 1024  }
  0xf7   : > { %703 = vsyncadd (%p573_p4), %s414_s19, 4294966272  ;;  %p19_p7 = scmp.ge.s32.totalorder %s783_s18, 4   ;;  %s993_s12 = smov %s710_s13 }
  0xf8   : > { %s994_s13 = smov %s714_s14  ;;  %s995_s14 = smov %s795_s21 }
  0xf9   : > { %s996_s15 = smov %s783_s18  ;;  %21 = sbr.rel (!%p19_p7) target bundleno = 7 (0x7), region = 113 }
  0xfe   :  { %419 = vsyncpa [#allocation3], 1 }
  0xff   :  { %421 = vsyncpa [#allocation3 + $0x1], 1 }
 0x100   :  { %422 = vsyncpa [#allocation6], 1 }
 0x101   :  { %424 = vsyncpa [#allocation6 + $0x1], 1 }
 0x102   :  { %425 = vsyncpa [#allocation4], 1 }
 0x103   :  { %427 = vsyncpa [#allocation4 + $0x1], 1 }

</bundles_post_ra>
